<compile_context>
chip_gen: v7x
topology: tpu7x:2x2x1
jax: 0.10.0
libtpu: 0.0.40
codegen_flags: <defaults>
</compile_context>

<pallas_src>
import functools

import jax
import jax.numpy as jnp
from jax.experimental import pallas as pl
from jax.experimental.pallas import tpu as pltpu

_NEG_BIG = -1e30   # exp(_NEG_BIG) == 0.0 ; marks padded rows so K row/col vanish


def _round_up(x, m):
    return ((x + m - 1) // m) * m


def _tpu_vmem_bytes():
    try:
        return int(pltpu.get_tpu_info().vmem_capacity_bytes)
    except Exception:
        return 64 * 1024 * 1024   # conservative (v7x-sized) fallback


def _pick_tile(n_pad, d_pad, mm_itemsize, vmem_bytes):
    """Largest 128-aligned K-tile whose per-step working set fits a
    generation-aware VMEM budget (128 MiB on v5e/v6e, 64 MiB on v7x)."""
    budget = min(vmem_bytes // 3, 48 * 1024 * 1024)
    t_cap = 512 if vmem_bytes <= 64 * 1024 * 1024 else 1024
    for t in (1024, 512, 256, 128):
        if t > t_cap or t > n_pad:
            continue
        # 2 feature streams x 2 pipeline buffers + ~5 live [t,t] f32 temporaries
        est = 2 * 2 * t * d_pad * mm_itemsize + 5 * t * t * 4
        if est <= budget:
            return t
    return 128


def _mmd_tile_kernel(i_ref, j_ref, kind_ref,
                     xi_ref, xj_ref, gsqi_ref, gsqj_ref, ai_ref, aj_ref,
                     pos_ref, neg_ref, pn_ref, *, steps_per_split):
    c = pl.program_id(0)
    s = pl.program_id(1)

    @pl.when(s == 0)
    def _init():
        pos_ref[...] = jnp.zeros_like(pos_ref)
        neg_ref[...] = jnp.zeros_like(neg_ref)
        pn_ref[...] = jnp.zeros_like(pn_ref)

    lin = c * steps_per_split + s
    kind = kind_ref[lin]                      # 0 = pad step, 1 = diag, 2 = upper
    f_same = (kind > 0).astype(jnp.float32)
    f_swap = (kind == 2).astype(jnp.float32)

    # RBF tile with gamma / -2 folded into the operands:
    #   K = exp(gamma*|xi|^2 + gamma*|xj|^2 + xi . (-2*gamma*xj))
    gram = jax.lax.dot_general(xi_ref[...], xj_ref[...],
                               (((1,), (1,)), ((), ())),
                               preferred_element_type=jnp.float32)      # [t, t]
    expo = gsqi_ref[...] + gsqj_ref[...] + gram
    # true exponent is <= 0 (gamma < 0, d2 >= 0); clamp guards bf16 rounding
    kmat = jnp.exp(jnp.minimum(expo, 0.0))                              # [t, t]

    ai = ai_ref[...]                           # [t, 1]
    aj = aj_ref[...]                           # [1, t]
    # One masked column-sum; the "b"-group sums come by subtraction.  Padded
    # rows/cols already have K == 0, so no explicit padding masks are needed.
    cola = jnp.sum(kmat * ai, axis=0, keepdims=True)                    # [1, t]
    colsum = jnp.sum(kmat, axis=0, keepdims=True)                       # [1, t]
    colb = colsum - cola
    bj = 1.0 - aj

    p_aa = jnp.sum(cola * aj)                  # a_i K a_j  (this tile)
    p_bb = jnp.sum(colb * bj)                  # b_i K b_j
    p_ab = jnp.sum(cola * bj)                  # a_i K b_j
    p_ba = jnp.sum(colb * aj)                  # b_i K a_j  (mirrored tile term)

    # Off-diagonal tiles also account for their mirrored (j, i) tile.
    pos_ref[...] += (f_same + f_swap) * p_aa
    neg_ref[...] += (f_same + f_swap) * p_bb
    pn_ref[...] += f_same * p_ab + f_swap * p_ba


def _loss_weights(y, a, n):
    nf = jnp.float32(n)
    b = 1.0 - a
    omy = 1.0 - y

    def sdiv(num, den):
        safe = jnp.where(den != 0.0, den, 1.0)
        return jnp.where(den != 0.0, num / safe, 0.0)

    p_cw = jnp.dot(y, a) / nf
    p_cb = jnp.dot(y, b) / nf
    p_bw = jnp.dot(omy, a) / nf
    p_bb = jnp.dot(omy, b) / nf
    p_c = jnp.sum(y) / nf
    p_bn = jnp.sum(omy) / nf
    p_w = jnp.sum(a) / nf
    p_k = jnp.sum(b) / nf

    w_cw = sdiv(p_c * p_w, p_cw)
    w_cb = sdiv(p_c * p_k, p_cb)
    w_bw = sdiv(p_bn * p_w, p_bw)
    w_bb = sdiv(p_bn * p_k, p_bb)

    wvec = w_cw * y * a + w_cb * y * b + w_bw * omy * a + w_bb * omy * b
    # matches torch (NaN on a fully-degenerate batch where all weights are 0)
    return wvec / jnp.sum(wvec)


def weighted_mmd_forward(yhat, y, features, auxiliary_labels, mmd_sigma=1.0,
                         matmul_dtype=jnp.bfloat16):
    """Returns (mmd_loss, weighted_ce_loss) matching Weighted_MMD.forward."""
    n, d = features.shape
    # TODO(synk): mmd_sigma == 'median' (data-dependent bandwidth from the
    # median pairwise euclidean distance) is not implemented in this path;
    # only a numeric sigma is supported.
    gamma = -0.5 / float(mmd_sigma) ** 2

    feats32 = features.astype(jnp.float32)
    yhat_f = jnp.reshape(yhat, (-1,)).astype(jnp.float32)
    y_f = jnp.reshape(y, (-1,)).astype(jnp.float32)
    a_f = jnp.reshape(auxiliary_labels, (-1,)).astype(jnp.float32)

    # ---- group-weighted BCE: tiny O(N) work, kept in XLA (frees kernel VMEM)
    wvec = _loss_weights(y_f, a_f, n)
    log_p = jnp.maximum(jnp.log(yhat_f), -100.0)       # BCELoss log clamp
    log_1mp = jnp.maximum(jnp.log(1.0 - yhat_f), -100.0)
    ce = -(y_f * log_p + (1.0 - y_f) * log_1mp)
    weighted_ce = jnp.dot(ce, wvec)

    # ---- MMD: Pallas kernel over the upper triangle of K's tile grid
    mm_itemsize = jnp.dtype(matmul_dtype).itemsize
    vmem_bytes = _tpu_vmem_bytes()
    d_pad = _round_up(d, 128)
    n_pad = _round_up(n, 128)
    t = _pick_tile(n_pad, d_pad, mm_itemsize, vmem_bytes)
    n_pad = _round_up(n_pad, t)

    feats_pad = jnp.pad(feats32, ((0, n_pad - n), (0, d_pad - d)))
    sqn = jnp.sum(feats32 * feats32, axis=-1)
    gsq = jnp.pad(gamma * sqn, (0, n_pad - n), constant_values=_NEG_BIG)
    a_pad = jnp.pad(a_f, (0, n_pad - n))

    feats_bf = feats_pad.astype(matmul_dtype)
    feats_scaled_bf = (feats_pad * jnp.float32(-2.0 * gamma)).astype(matmul_dtype)
    gsq_col = gsq.reshape(n_pad, 1)
    gsq_row = gsq.reshape(1, n_pad)
    a_col = a_pad.reshape(n_pad, 1)
    a_row = a_pad.reshape(1, n_pad)

    # Upper-triangle tile-pair schedule, split for the megacore parallel axis.
    n_tiles = n_pad // t
    pairs = [(i, j) for i in range(n_tiles) for j in range(i, n_tiles)]
    count = len(pairs)
    n_splits = 2 if count >= 2 else 1
    sps = -(-count // n_splits)                 # steps per split
    total = n_splits * sps
    i_idx = jnp.asarray([p[0] for p in pairs] + [0] * (total - count), jnp.int32)
    j_idx = jnp.asarray([p[1] for p in pairs] + [0] * (total - count), jnp.int32)
    kind = jnp.asarray([1 if p[0] == p[1] else 2 for p in pairs]
                       + [0] * (total - count), jnp.int32)

    kernel = functools.partial(_mmd_tile_kernel, steps_per_split=sps)
    acc_shape = jax.ShapeDtypeStruct((n_splits * 8, 128), jnp.float32)
    out_acc_spec = pl.BlockSpec((8, 128), lambda c, s, ii, jj, kk: (c, 0))
    vmem_limit = int(min(max(vmem_bytes * 3 // 4, 32 * 1024 * 1024),
                         100 * 1024 * 1024))

    pos_o, neg_o, pn_o = pl.pallas_call(
        kernel,
        out_shape=(acc_shape, acc_shape, acc_shape),
        grid_spec=pltpu.PrefetchScalarGridSpec(
            num_scalar_prefetch=3,
            grid=(n_splits, sps),
            in_specs=[
                # x_i tile (unscaled), x_j tile (prescaled by -2*gamma)
                pl.BlockSpec((t, d_pad),
                             lambda c, s, ii, jj, kk: (ii[c * sps + s], 0)),
                pl.BlockSpec((t, d_pad),
                             lambda c, s, ii, jj, kk: (jj[c * sps + s], 0)),
                # gamma*|x|^2 as column / row
                pl.BlockSpec((t, 1),
                             lambda c, s, ii, jj, kk: (ii[c * sps + s], 0)),
                pl.BlockSpec((1, t),
                             lambda c, s, ii, jj, kk: (0, jj[c * sps + s])),
                # auxiliary-label mask as column / row
                pl.BlockSpec((t, 1),
                             lambda c, s, ii, jj, kk: (ii[c * sps + s], 0)),
                pl.BlockSpec((1, t),
                             lambda c, s, ii, jj, kk: (0, jj[c * sps + s])),
            ],
            out_specs=[out_acc_spec, out_acc_spec, out_acc_spec],
        ),
        compiler_params=pltpu.CompilerParams(
            dimension_semantics=("parallel", "arbitrary"),
            vmem_limit_bytes=vmem_limit),
    )(i_idx, j_idx, kind,
      feats_bf, feats_scaled_bf, gsq_col, gsq_row, a_col, a_row)

    def collect(o):
        # every element of a split's (8,128) block holds the same total
        return jnp.sum(o.reshape(n_splits, 8, 128)[:, 0, 0])

    s_pos, s_neg, s_pn = collect(pos_o), collect(neg_o), collect(pn_o)

    sum_a = jnp.sum(a_f)
    sum_b = jnp.float32(n) - sum_a

    def sinv(x):
        return jnp.where(x != 0.0, 1.0 / jnp.where(x != 0.0, x, 1.0), 0.0)

    mmd = (sinv(sum_a * sum_a) * s_pos + sinv(sum_b * sum_b) * s_neg
           - 2.0 * sinv(sum_a * sum_b) * s_pn)
    mmd_loss = jnp.maximum(jnp.float32(0.0), mmd)
    return mmd_loss, weighted_ce


if __name__ == "__main__":
    key = jax.random.PRNGKey(0)
    k1, k2, k3, k4 = jax.random.split(key, 4)

    N, D = 8, 32
    yhat = jax.nn.sigmoid(jax.random.normal(k1, (N,), dtype=jnp.float32))
    y = (jax.random.uniform(k2, (N,)) > 0.5).astype(jnp.float32)
    auxiliary_labels = (jax.random.uniform(k3, (N,)) > 0.5).astype(jnp.float32)
    features = jax.random.normal(k4, (N, D), dtype=jnp.float32)

    mmd_loss, weighted_ce_loss = weighted_mmd_forward(
        yhat, y, features, auxiliary_labels, mmd_sigma=1.0)
    jax.block_until_ready((mmd_loss, weighted_ce_loss))
    print("KERNEL_OK")
</pallas_src>

<mosaic_0001>
module attributes {stable_mosaic.version = 11 : i64} {
  func.func @_mmd_tile_kernel(%arg0: i32, %arg1: i32, %arg2: memref<1xi32, #tpu.memory_space<smem>>, %arg3: memref<1xi32, #tpu.memory_space<smem>>, %arg4: memref<1xi32, #tpu.memory_space<smem>>, %arg5: memref<128x128xbf16, #tpu.memory_space<vmem>>, %arg6: memref<128x128xbf16, #tpu.memory_space<vmem>>, %arg7: memref<128x1xf32, #tpu.memory_space<vmem>>, %arg8: memref<1x128xf32, #tpu.memory_space<vmem>>, %arg9: memref<128x1xf32, #tpu.memory_space<vmem>>, %arg10: memref<1x128xf32, #tpu.memory_space<vmem>>, %arg11: memref<8x128xf32, #tpu.memory_space<vmem>>, %arg12: memref<8x128xf32, #tpu.memory_space<vmem>>, %arg13: memref<8x128xf32, #tpu.memory_space<vmem>>) attributes {dimension_semantics = [#tpu.dimension_semantics<parallel>, #tpu.dimension_semantics<arbitrary>], iteration_bounds = array<i64: 1, 1>, scalar_prefetch = 3 : i64, scratch_operands = 0 : i64, tpu.core_type = #tpu.core_type<tc>, window_params = [{transform_indices = @transform_0, window_bounds = array<i64: 128, 128>}, {transform_indices = @transform_1, window_bounds = array<i64: 128, 128>}, {transform_indices = @transform_2, window_bounds = array<i64: 128, 1>}, {transform_indices = @transform_3, window_bounds = array<i64: 1, 128>}, {transform_indices = @transform_4, window_bounds = array<i64: 128, 1>}, {transform_indices = @transform_5, window_bounds = array<i64: 1, 128>}, {transform_indices = @transform_6, window_bounds = array<i64: 8, 128>}, {transform_indices = @transform_7, window_bounds = array<i64: 8, 128>}, {transform_indices = @transform_8, window_bounds = array<i64: 8, 128>}]} {
    %c0_i32 = arith.constant 0 : i32
    %0 = arith.cmpi eq, %arg1, %c0_i32 : i32
    %1 = arith.extui %0 : i1 to i32
    %c0_i32_0 = arith.constant 0 : i32
    %2 = arith.cmpi ne, %1, %c0_i32_0 : i32
    scf.if %2 {
      %cst_33 = arith.constant 0.000000e+00 : f32
      %75 = vector.broadcast %cst_33 : f32 to vector<8x128xf32>
      %c0_34 = arith.constant 0 : index
      %c0_35 = arith.constant 0 : index
      %76 = vector.load %arg11[%c0_34, %c0_35] : memref<8x128xf32, #tpu.memory_space<vmem>>, vector<8x128xf32>
      tpu.vector_store %arg11[%c0_34, %c0_35], %75 {strides = array<i32>} : memref<8x128xf32, #tpu.memory_space<vmem>>, vector<8x128xf32>,
      %cst_36 = arith.constant 0.000000e+00 : f32
      %77 = vector.broadcast %cst_36 : f32 to vector<8x128xf32>
      %c0_37 = arith.constant 0 : index
      %c0_38 = arith.constant 0 : index
      %78 = vector.load %arg12[%c0_37, %c0_38] : memref<8x128xf32, #tpu.memory_space<vmem>>, vector<8x128xf32>
      tpu.vector_store %arg12[%c0_37, %c0_38], %77 {strides = array<i32>} : memref<8x128xf32, #tpu.memory_space<vmem>>, vector<8x128xf32>,
      %cst_39 = arith.constant 0.000000e+00 : f32
      %79 = vector.broadcast %cst_39 : f32 to vector<8x128xf32>
      %c0_40 = arith.constant 0 : index
      %c0_41 = arith.constant 0 : index
      %80 = vector.load %arg13[%c0_40, %c0_41] : memref<8x128xf32, #tpu.memory_space<vmem>>, vector<8x128xf32>
      tpu.vector_store %arg13[%c0_40, %c0_41], %79 {strides = array<i32>} : memref<8x128xf32, #tpu.memory_space<vmem>>, vector<8x128xf32>,
    } else {
    }
    %c1_i32 = arith.constant 1 : i32
    %3 = arith.muli %arg0, %c1_i32 : i32
    %4 = arith.addi %3, %arg1 : i32
    %5 = arith.index_cast %4 : i32 to index
    %6 = memref.load %arg4[%5] : memref<1xi32, #tpu.memory_space<smem>>
    %c0_i32_1 = arith.constant 0 : i32
    %7 = arith.cmpi sgt, %6, %c0_i32_1 : i32
    %8 = arith.extui %7 : i1 to i32
    %9 = arith.sitofp %8 : i32 to f32
    %c2_i32 = arith.constant 2 : i32
    %10 = arith.cmpi eq, %6, %c2_i32 : i32
    %11 = arith.extui %10 : i1 to i32
    %12 = arith.sitofp %11 : i32 to f32
    %c0 = arith.constant 0 : index
    %c0_2 = arith.constant 0 : index
    %13 = vector.load %arg5[%c0, %c0_2] : memref<128x128xbf16, #tpu.memory_space<vmem>>, vector<128x128xbf16>
    %c0_3 = arith.constant 0 : index
    %c0_4 = arith.constant 0 : index
    %14 = vector.load %arg6[%c0_3, %c0_4] : memref<128x128xbf16, #tpu.memory_space<vmem>>, vector<128x128xbf16>
    %cst = arith.constant dense<0.000000e+00> : vector<128x128xf32>
    %15 = tpu.matmul %13, %14, %cst {dimension_numbers = #tpu.dot_dimension_numbers<[1], [1], [0], [0], [0, 0, 1, 0], [], []>} : vector<128x128xbf16>, vector<128x128xbf16>, vector<128x128xf32> -> vector<128x128xf32>
    %c0_5 = arith.constant 0 : index
    %c0_6 = arith.constant 0 : index
    %16 = vector.load %arg7[%c0_5, %c0_6] : memref<128x1xf32, #tpu.memory_space<vmem>>, vector<128x1xf32>
    %c0_7 = arith.constant 0 : index
    %c0_8 = arith.constant 0 : index
    %17 = vector.load %arg8[%c0_7, %c0_8] : memref<1x128xf32, #tpu.memory_space<vmem>>, vector<1x128xf32>
    %18 = vector.broadcast %16 : vector<128x1xf32> to vector<128x128xf32>
    %19 = vector.broadcast %17 : vector<1x128xf32> to vector<128x128xf32>
    %20 = arith.addf %18, %19 : vector<128x128xf32>
    %21 = arith.addf %20, %15 : vector<128x128xf32>
    %cst_9 = arith.constant 0.000000e+00 : f32
    %22 = vector.broadcast %cst_9 : f32 to vector<128x128xf32>
    %23 = arith.minimumf %21, %22 : vector<128x128xf32>
    %24 = math.exp %23 : vector<128x128xf32>
    %c0_10 = arith.constant 0 : index
    %c0_11 = arith.constant 0 : index
    %25 = vector.load %arg9[%c0_10, %c0_11] : memref<128x1xf32, #tpu.memory_space<vmem>>, vector<128x1xf32>
    %c0_12 = arith.constant 0 : index
    %c0_13 = arith.constant 0 : index
    %26 = vector.load %arg10[%c0_12, %c0_13] : memref<1x128xf32, #tpu.memory_space<vmem>>, vector<1x128xf32>
    %27 = vector.broadcast %25 : vector<128x1xf32> to vector<128x128xf32>
    %28 = arith.mulf %24, %27 : vector<128x128xf32>
    %cst_14 = arith.constant dense<0.000000e+00> : vector<128xf32>
    %29 = vector.multi_reduction <add>, %28, %cst_14 [0] : vector<128x128xf32> to vector<128xf32>
    %30 = vector.shape_cast %29 : vector<128xf32> to vector<1x128xf32>
    %cst_15 = arith.constant dense<0.000000e+00> : vector<128xf32>
    %31 = vector.multi_reduction <add>, %24, %cst_15 [0] : vector<128x128xf32> to vector<128xf32>
    %32 = vector.shape_cast %31 : vector<128xf32> to vector<1x128xf32>
    %33 = arith.subf %32, %30 : vector<1x128xf32>
    %cst_16 = arith.constant 1.000000e+00 : f32
    %34 = vector.broadcast %cst_16 : f32 to vector<1x128xf32>
    %35 = arith.subf %34, %26 : vector<1x128xf32>
    %36 = arith.mulf %30, %26 : vector<1x128xf32>
    %37 = vector.shape_cast %36 : vector<1x128xf32> to vector<1x1x128xf32>
    %cst_17 = arith.constant dense<0.000000e+00> : vector<1xf32>
    %38 = vector.multi_reduction <add>, %37, %cst_17 [1, 2] : vector<1x1x128xf32> to vector<1xf32>
    %39 = vector.shape_cast %38 : vector<1xf32> to vector<1x1x1xf32>
    %40 = vector.extract %39[0, 0, 0] : f32 from vector<1x1x1xf32>
    %41 = arith.mulf %33, %35 : vector<1x128xf32>
    %42 = vector.shape_cast %41 : vector<1x128xf32> to vector<1x1x128xf32>
    %cst_18 = arith.constant dense<0.000000e+00> : vector<1xf32>
    %43 = vector.multi_reduction <add>, %42, %cst_18 [1, 2] : vector<1x1x128xf32> to vector<1xf32>
    %44 = vector.shape_cast %43 : vector<1xf32> to vector<1x1x1xf32>
    %45 = vector.extract %44[0, 0, 0] : f32 from vector<1x1x1xf32>
    %46 = arith.mulf %30, %35 : vector<1x128xf32>
    %47 = vector.shape_cast %46 : vector<1x128xf32> to vector<1x1x128xf32>
    %cst_19 = arith.constant dense<0.000000e+00> : vector<1xf32>
    %48 = vector.multi_reduction <add>, %47, %cst_19 [1, 2] : vector<1x1x128xf32> to vector<1xf32>
    %49 = vector.shape_cast %48 : vector<1xf32> to vector<1x1x1xf32>
    %50 = vector.extract %49[0, 0, 0] : f32 from vector<1x1x1xf32>
    %51 = arith.mulf %33, %26 : vector<1x128xf32>
    %52 = vector.shape_cast %51 : vector<1x128xf32> to vector<1x1x128xf32>
    %cst_20 = arith.constant dense<0.000000e+00> : vector<1xf32>
    %53 = vector.multi_reduction <add>, %52, %cst_20 [1, 2] : vector<1x1x128xf32> to vector<1xf32>
    %54 = vector.shape_cast %53 : vector<1xf32> to vector<1x1x1xf32>
    %55 = vector.extract %54[0, 0, 0] : f32 from vector<1x1x1xf32>
    %c0_21 = arith.constant 0 : index
    %c0_22 = arith.constant 0 : index
    %56 = vector.load %arg11[%c0_21, %c0_22] : memref<8x128xf32, #tpu.memory_space<vmem>>, vector<8x128xf32>
    %57 = arith.addf %9, %12 : f32
    %58 = arith.mulf %57, %40 : f32
    %59 = vector.broadcast %58 : f32 to vector<8x128xf32>
    %60 = arith.addf %56, %59 : vector<8x128xf32>
    %c0_23 = arith.constant 0 : index
    %c0_24 = arith.constant 0 : index
    %61 = vector.load %arg11[%c0_23, %c0_24] : memref<8x128xf32, #tpu.memory_space<vmem>>, vector<8x128xf32>
    tpu.vector_store %arg11[%c0_23, %c0_24], %60 {strides = array<i32>} : memref<8x128xf32, #tpu.memory_space<vmem>>, vector<8x128xf32>,
    %c0_25 = arith.constant 0 : index
    %c0_26 = arith.constant 0 : index
    %62 = vector.load %arg12[%c0_25, %c0_26] : memref<8x128xf32, #tpu.memory_space<vmem>>, vector<8x128xf32>
    %63 = arith.addf %9, %12 : f32
    %64 = arith.mulf %63, %45 : f32
    %65 = vector.broadcast %64 : f32 to vector<8x128xf32>
    %66 = arith.addf %62, %65 : vector<8x128xf32>
    %c0_27 = arith.constant 0 : index
    %c0_28 = arith.constant 0 : index
    %67 = vector.load %arg12[%c0_27, %c0_28] : memref<8x128xf32, #tpu.memory_space<vmem>>, vector<8x128xf32>
    tpu.vector_store %arg12[%c0_27, %c0_28], %66 {strides = array<i32>} : memref<8x128xf32, #tpu.memory_space<vmem>>, vector<8x128xf32>,
    %c0_29 = arith.constant 0 : index
    %c0_30 = arith.constant 0 : index
    %68 = vector.load %arg13[%c0_29, %c0_30] : memref<8x128xf32, #tpu.memory_space<vmem>>, vector<8x128xf32>
    %69 = arith.mulf %9, %50 : f32
    %70 = arith.mulf %12, %55 : f32
    %71 = arith.addf %69, %70 : f32
    %72 = vector.broadcast %71 : f32 to vector<8x128xf32>
    %73 = arith.addf %68, %72 : vector<8x128xf32>
    %c0_31 = arith.constant 0 : index
    %c0_32 = arith.constant 0 : index
    %74 = vector.load %arg13[%c0_31, %c0_32] : memref<8x128xf32, #tpu.memory_space<vmem>>, vector<8x128xf32>
    tpu.vector_store %arg13[%c0_31, %c0_32], %73 {strides = array<i32>} : memref<8x128xf32, #tpu.memory_space<vmem>>, vector<8x128xf32>,
    return
  }
  func.func @transform_0(%arg0: i32, %arg1: i32, %arg2: memref<1xi32, #tpu.memory_space<smem>>, %arg3: memref<1xi32, #tpu.memory_space<smem>>, %arg4: memref<1xi32, #tpu.memory_space<smem>>) -> (i32, i32) {
    %c1_i32 = arith.constant 1 : i32
    %0 = arith.muli %arg0, %c1_i32 : i32
    %1 = arith.addi %0, %arg1 : i32
    %2 = arith.index_cast %1 : i32 to index
    %3 = memref.load %arg2[%2] : memref<1xi32, #tpu.memory_space<smem>>
    %c0_i32 = arith.constant 0 : i32
    %c0_i32_0 = arith.constant 0 : i32
    return %3, %c0_i32 : i32, i32
  }
  func.func @transform_1(%arg0: i32, %arg1: i32, %arg2: memref<1xi32, #tpu.memory_space<smem>>, %arg3: memref<1xi32, #tpu.memory_space<smem>>, %arg4: memref<1xi32, #tpu.memory_space<smem>>) -> (i32, i32) {
    %c1_i32 = arith.constant 1 : i32
    %0 = arith.muli %arg0, %c1_i32 : i32
    %1 = arith.addi %0, %arg1 : i32
    %2 = arith.index_cast %1 : i32 to index
    %3 = memref.load %arg3[%2] : memref<1xi32, #tpu.memory_space<smem>>
    %c0_i32 = arith.constant 0 : i32
    %c0_i32_0 = arith.constant 0 : i32
    return %3, %c0_i32 : i32, i32
  }
  func.func @transform_2(%arg0: i32, %arg1: i32, %arg2: memref<1xi32, #tpu.memory_space<smem>>, %arg3: memref<1xi32, #tpu.memory_space<smem>>, %arg4: memref<1xi32, #tpu.memory_space<smem>>) -> (i32, i32) {
    %c1_i32 = arith.constant 1 : i32
    %0 = arith.muli %arg0, %c1_i32 : i32
    %1 = arith.addi %0, %arg1 : i32
    %2 = arith.index_cast %1 : i32 to index
    %3 = memref.load %arg2[%2] : memref<1xi32, #tpu.memory_space<smem>>
    %c0_i32 = arith.constant 0 : i32
    %c0_i32_0 = arith.constant 0 : i32
    return %3, %c0_i32 : i32, i32
  }
  func.func @transform_3(%arg0: i32, %arg1: i32, %arg2: memref<1xi32, #tpu.memory_space<smem>>, %arg3: memref<1xi32, #tpu.memory_space<smem>>, %arg4: memref<1xi32, #tpu.memory_space<smem>>) -> (i32, i32) {
    %c1_i32 = arith.constant 1 : i32
    %0 = arith.muli %arg0, %c1_i32 : i32
    %1 = arith.addi %0, %arg1 : i32
    %2 = arith.index_cast %1 : i32 to index
    %3 = memref.load %arg3[%2] : memref<1xi32, #tpu.memory_space<smem>>
    %c0_i32 = arith.constant 0 : i32
    %c0_i32_0 = arith.constant 0 : i32
    return %c0_i32, %3 : i32, i32
  }
  func.func @transform_4(%arg0: i32, %arg1: i32, %arg2: memref<1xi32, #tpu.memory_space<smem>>, %arg3: memref<1xi32, #tpu.memory_space<smem>>, %arg4: memref<1xi32, #tpu.memory_space<smem>>) -> (i32, i32) {
    %c1_i32 = arith.constant 1 : i32
    %0 = arith.muli %arg0, %c1_i32 : i32
    %1 = arith.addi %0, %arg1 : i32
    %2 = arith.index_cast %1 : i32 to index
    %3 = memref.load %arg2[%2] : memref<1xi32, #tpu.memory_space<smem>>
    %c0_i32 = arith.constant 0 : i32
    %c0_i32_0 = arith.constant 0 : i32
    return %3, %c0_i32 : i32, i32
  }
  func.func @transform_5(%arg0: i32, %arg1: i32, %arg2: memref<1xi32, #tpu.memory_space<smem>>, %arg3: memref<1xi32, #tpu.memory_space<smem>>, %arg4: memref<1xi32, #tpu.memory_space<smem>>) -> (i32, i32) {
    %c1_i32 = arith.constant 1 : i32
    %0 = arith.muli %arg0, %c1_i32 : i32
    %1 = arith.addi %0, %arg1 : i32
    %2 = arith.index_cast %1 : i32 to index
    %3 = memref.load %arg3[%2] : memref<1xi32, #tpu.memory_space<smem>>
    %c0_i32 = arith.constant 0 : i32
    %c0_i32_0 = arith.constant 0 : i32
    return %c0_i32, %3 : i32, i32
  }
  func.func @transform_6(%arg0: i32, %arg1: i32, %arg2: memref<1xi32, #tpu.memory_space<smem>>, %arg3: memref<1xi32, #tpu.memory_space<smem>>, %arg4: memref<1xi32, #tpu.memory_space<smem>>) -> (i32, i32) {
    %c0_i32 = arith.constant 0 : i32
    %c0_i32_0 = arith.constant 0 : i32
    return %arg0, %c0_i32 : i32, i32
  }
  func.func @transform_7(%arg0: i32, %arg1: i32, %arg2: memref<1xi32, #tpu.memory_space<smem>>, %arg3: memref<1xi32, #tpu.memory_space<smem>>, %arg4: memref<1xi32, #tpu.memory_space<smem>>) -> (i32, i32) {
    %c0_i32 = arith.constant 0 : i32
    %c0_i32_0 = arith.constant 0 : i32
    return %arg0, %c0_i32 : i32, i32
  }
  func.func @transform_8(%arg0: i32, %arg1: i32, %arg2: memref<1xi32, #tpu.memory_space<smem>>, %arg3: memref<1xi32, #tpu.memory_space<smem>>, %arg4: memref<1xi32, #tpu.memory_space<smem>>) -> (i32, i32) {
    %c0_i32 = arith.constant 0 : i32
    %c0_i32_0 = arith.constant 0 : i32
    return %arg0, %c0_i32 : i32, i32
  }
}

</mosaic_0001>

<bundles_post_ra>
// kernel: tpu_custom_call.1
= control target key start
LH: loop header
LB: loop body
LE: loop exit
PB: predicated region body
PF: predicated region fallthrough
CT: control target
= control target key end

     0   :  { %20 = vsyncpa [#allocation7], 0  ;;  %s1381_s0 = inlined_call_operand.<no memory space> [shape: s32[1], index: 0, kind: input, shape index: {}]   ;;  %s1382_s1 = inlined_call_operand.<no memory space> [shape: s32[1], index: 1, kind: input, shape index: {}]   ;;  %s1383_s2 = inlined_call_operand.<no memory space> [shape: s32[1], index: 2, kind: input, shape index: {}]   ;;  %s1384_s3 = inlined_call_operand.vmem [shape: bf16[128,128], index: 3, kind: input, shape index: {}]   ;;  %s1385_s4 = inlined_call_operand.vmem [shape: bf16[128,128], index: 4, kind: input, shape index: {}]   ;;  %s1386_s5 = inlined_call_operand.vmem [shape: f32[128,1], index: 5, kind: input, shape index: {}]   ;;  %s1387_s6 = inlined_call_operand.vmem [shape: f32[1,128], index: 6, kind: input, shape index: {}]   ;;  %s1388_s7 = inlined_call_operand.vmem [shape: f32[128,1], index: 7, kind: input, shape index: {}]   ;;  %s1389_s8 = inlined_call_operand.vmem [shape: f32[1,128], index: 8, kind: input, shape index: {}]   ;;  %s1390_s9 = inlined_call_operand.hbm [shape: f32[8,128], index: 9, kind: output, shape index: {0}]   ;;  %s1391_s10 = inlined_call_operand.hbm [shape: f32[8,128], index: 10, kind: output, shape index: {1}]   ;;  %s1392_s11 = inlined_call_operand.hbm [shape: f32[8,128], index: 11, kind: output, shape index: {2}]  }
   0x1   :  { %s897_s19 = sshll.u32 %s1382_s1, 4  ;;  %s895_s22 = sshll.u32 %s1381_s0, 4 }
   0x2   :  { %21 = vsyncpa [#allocation9], 0  ;;  %p139_p0 = scmp.lt.s32.totalorder %s897_s19, 15  ;;  %p129_p1 = scmp.lt.s32.totalorder %s895_s22, 15  ;;  %v1117_v0 = vmov 0   ;;  %vm762_vm0 = vcmask 1040384  }
   0x3   :  { %997 = vset.pattern.permute.xlu0 %v1117_v0  ;;  %998 = vset.pattern.permute.xlu1 %v1117_v0  ;;  %p158_p2 = scmp.lt.s32.totalorder %s1382_s1, 0  ;;  %p190_p3 = scmp.gt.s32.totalorder %s1383_s2, 0 }
   0x4   :  { %s1394_s19 = smov (!%p139_p0, %s897_s19), 15  ;;  %s1396_s22 = smov (!%p129_p1, %s895_s22), 15 }
   0x5   :  { %s898_s23 = sshll.u32 %s1394_s19, 2  ;;  %s896_s0 = sshll.u32 %s1396_s22, 2 }
   0x6   :  { %s1192_s26 = scalar_lea.vmem %s1385_s4, %s898_s23  ;;  %s1200_s29 = scalar_lea.vmem %s1384_s3, %s896_s0 }
   0x7   :  { %v999_v1 = vld [vmem:[%s1192_s26] sm:$0xff]   ;;  %v1000_v2 = vld [vmem:[%s1192_s26 + $0x8] sm:$0xff]   ;;  %v1001_v3 = vld [vmem:[%s1192_s26 + $0x10] sm:$0xff]   ;;  %s900_s4 = sshll.u32 %s1396_s22, 3  ;;  %s1398_s1 = smov (!%p158_p2, %s1382_s1), 0 }
   0x8   :  { %936 = vmatprep.subr.bf16.mxu0 %v999_v1  ;;  %968 = vmatprep.subr.bf16.mxu1 %v999_v1  ;;  %v1007_v4 = vld [vmem:[%s1200_s29] sm:$0xff]   ;;  %s1211_s13 = scalar_lea.vmem %s1386_s5, %s900_s4  ;;  %v1002_v6 = vld [vmem:[%s1192_s26 + $0x18] sm:$0xff]   ;;  %s1230_s14 = scalar_lea.vmem %s1388_s7, %s900_s4  ;;  %v1004_v18 = vld [vmem:[%s1192_s26 + $0x28] sm:$0xff]  }
   0x9   :  { %937 = vmatpush3.bf16.xpose.msra.mxu0 %v999_v1  ;;  %976 = vmatpush3.bf16.xpose.msra.mxu1 %v999_v1  ;;  %v1008_v5 = vld [vmem:[%s1200_s29 + $0x20] sm:$0xff]   ;;  %v423_v8 = vld [vmem:[%s1211_s13 + $0x10] sm:$0xff]  ;;  %v422_v9 = vld [vmem:[%s1211_s13 + $0x8] sm:$0xff]  ;;  %s160_s20 = scalar_lea.vmem %s1387_s6, %s1398_s1  ;;  %s177_s22 = scalar_lea.vmem %s1389_s8, %s1398_s1 }
   0xa   :  { %938 = vmatprep.subr.bf16.mxu0 %v1000_v2  ;;  %969 = vmatprep.subr.bf16.mxu1 %v1000_v2  ;;  %v421_v7 = vld [vmem:[%s1211_s13] sm:$0xff]  ;;  %v424_v10 = vld [vmem:[%s1211_s13 + $0x18] sm:$0xff]  ;;  %v426_v12 = vld [vmem:[%s1211_s13 + $0x28] sm:$0xff]  ;;  %p193_p4 = scmp.eq.s32.totalorder %s1383_s2, 2  ;;  %s1118_s30 = smov [#allocation6]  }
   0xb   :  { %952 = vmatprep.mubr.bf16.mxu0 %v1007_v4  ;;  %960 = vmatprep.mubr.bf16.mxu1 %v1008_v5  ;;  %v425_v11 = vld [vmem:[%s1211_s13 + $0x20] sm:$0xff]  ;;  %v427_v14 = vld [vmem:[%s1211_s13 + $0x30] sm:$0xff]  ;;  %v428_v15 = vld [vmem:[%s1211_s13 + $0x38] sm:$0xff]  ;;  %s1324_s25 = scalar_select %p190_p3, 1, 0 }
   0xc   :  { %440 = vperm.xlu0 %997, %v421_v7   ;;  %450 = vperm.xlu1 %998, %v423_v8   ;;  %v1003_v13 = vld [vmem:[%s1192_s26 + $0x20] sm:$0xff]   ;;  %v430_v17 = vld [vmem:[%s1211_s13 + $0x48] sm:$0xff]  ;;  %v431_v19 = vld [vmem:[%s1211_s13 + $0x50] sm:$0xff]  ;;  %s830_s12 = sshll.u32 %s1118_s30, 4  ;;  %s1119_s3 = smov [#allocation8]   ;;  %s831_s12 = int_to_ptr.vmem [resolvable:$true] %s830_s12 }
   0xd   :  { %v429_v16 = vld [vmem:[%s1211_s13 + $0x40] sm:$0xff]  ;;  %v605_v21 = vld [vmem:[%s1230_s14 + $0x8] sm:$0xff]  ;;  %v432_v22 = vld [vmem:[%s1211_s13 + $0x58] sm:$0xff]  ;;  %s192_s0 = scvt.s32.f32 %s1324_s25  ;;  %s840_s5 = sshll.u32 %s1119_s3, 4  ;;  %s1334_s5 = int_to_ptr.vmem [resolvable:$true] %s840_s5 }
   0xe   :  { %v604_v20 = vld [vmem:[%s1230_s14] sm:$0xff]  ;;  %v1005_v23 = vld [vmem:[%s1192_s26 + $0x30] sm:$0xff]   ;;  %v607_v26 = vld [vmem:[%s1230_s14 + $0x18] sm:$0xff]  ;;  %s1047_s7 = scalar_lea.vmem %s831_s12, 128  ;;  %p1052_p6 = scmp.lt.s32.totalorder %s831_s12, %s831_s12 }
   0xf   :  { %v606_v24 = vld [vmem:[%s1230_s14 + $0x10] sm:$0xff]  ;;  %v433_v25 = vld [vmem:[%s1211_s13 + $0x60] sm:$0xff]  ;;  %v434_v27 = vld [vmem:[%s1211_s13 + $0x68] sm:$0xff]  ;;  %p1048_p5 = scmp.ne.s32.totalorder %s831_s12, %s1047_s7  ;;  %p1053_p7 = scmp.lt.s32.totalorder %s1047_s7, %s1047_s7 }
  0x10   :  { %445 = vperm.xlu0 %997, %v422_v9   ;;  %455 = vperm.xlu1 %998, %v424_v10   ;;  %v1006_v28 = vld [vmem:[%s1192_s26 + $0x38] sm:$0xff]   ;;  %v608_v29 = vld [vmem:[%s1230_s14 + $0x20] sm:$0xff]  ;;  %v435_v30 = vld [vmem:[%s1211_s13 + $0x70] sm:$0xff]  ;;  %s1326_s26 = scalar_select %p193_p4, 1, 0 }
  0x11   :  { %939 = vmatpush3.bf16.xpose.msra.mxu0 %v1000_v2  ;;  %977 = vmatpush3.bf16.xpose.msra.mxu1 %v1000_v2  ;;  %v609_v31 = vld [vmem:[%s1230_s14 + $0x28] sm:$0xff]  ;;  %v436_v32 = vld [vmem:[%s1211_s13 + $0x78] sm:$0xff]  ;;  %v610_v33 = vld [vmem:[%s1230_s14 + $0x30] sm:$0xff]  ;;  %p1054_p8 = por %p1053_p7, %p1052_p6 }
  0x12   :  { %940 = vmatprep.subr.bf16.mxu0 %v1001_v3  ;;  %970 = vmatprep.subr.bf16.mxu1 %v1001_v3  ;;  %v611_v34 = vld [vmem:[%s1230_s14 + $0x38] sm:$0xff]  ;;  %v1009_v35 = vld [vmem:[%s1200_s29 + $0x8] sm:$0xff]   ;;  %v612_v37 = vld [vmem:[%s1230_s14 + $0x40] sm:$0xff]  ;;  %s195_s27 = scvt.s32.f32 %s1326_s26 }
  0x13   :  { %v1010_v36 = vld [vmem:[%s1200_s29 + $0x28] sm:$0xff]   ;;  %v1011_v39 = vld [vmem:[%s1200_s29 + $0x10] sm:$0xff]   ;;  %v615_v42 = vld [vmem:[%s1230_s14 + $0x58] sm:$0xff]  ;;  %p1055_p9 = pnand %p1054_p8, %p1048_p5 }
  0x14   :  { %460 = vperm.xlu0 %997, %v425_v11   ;;  %465 = vperm.xlu1 %998, %v426_v12   ;;  %v613_v38 = vld [vmem:[%s1230_s14 + $0x48] sm:$0xff]  ;;  %v1012_v40 = vld [vmem:[%s1200_s29 + $0x30] sm:$0xff]   ;;  %v1013_v43 = vld [vmem:[%s1200_s29 + $0x18] sm:$0xff]   ;;  %s807_s28 = sadd.f32 %s195_s27, %s192_s0 }
  0x15   :  { %v614_v41 = vld [vmem:[%s1230_s14 + $0x50] sm:$0xff]  ;;  %v1014_v44 = vld [vmem:[%s1200_s29 + $0x38] sm:$0xff]   ;;  %v616_v45 = vld [vmem:[%s1230_s14 + $0x60] sm:$0xff] }
  0x16   :  { %v617_v46 = vld [vmem:[%s1230_s14 + $0x68] sm:$0xff]  ;;  %v618_v47 = vld [vmem:[%s1230_s14 + $0x70] sm:$0xff]  ;;  %v619_v48 = vld [vmem:[%s1230_s14 + $0x78] sm:$0xff] }
  0x17   :  { %v1279_v63 = vld [vmem:[%s160_s20] ss:$0 sm:$0xff] }
  0x18   :  { %470 = vperm.xlu0 %997, %v427_v14   ;;  %475 = vperm.xlu1 %998, %v428_v15  }
  0x19   :  { %941 = vmatpush3.bf16.xpose.msra.mxu0 %v1001_v3  ;;  %978 = vmatpush3.bf16.xpose.msra.mxu1 %v1001_v3 }
  0x1a   :  { %942 = vmatprep.subr.bf16.mxu0 %v1002_v6  ;;  %971 = vmatprep.subr.bf16.mxu1 %v1002_v6 }
  0x1c   :  { %480 = vperm.xlu0 %997, %v429_v16   ;;  %485 = vperm.xlu1 %998, %v430_v17  }
  0x20   :  { %490 = vperm.xlu0 %997, %v431_v19   ;;  %623 = vperm.xlu1 %998, %v604_v20  }
  0x21   :  { %943 = vmatpush3.bf16.xpose.msra.mxu0 %v1002_v6  ;;  %979 = vmatpush3.bf16.xpose.msra.mxu1 %v1002_v6 }
  0x22   :  { %944 = vmatprep.subr.bf16.mxu0 %v1003_v13  ;;  %972 = vmatprep.subr.bf16.mxu1 %v1003_v13 }
  0x24   :  { %628 = vperm.xlu0 %997, %v605_v21   ;;  %495 = vperm.xlu1 %998, %v432_v22  }
  0x28   :  { %633 = vperm.xlu0 %997, %v606_v24   ;;  %500 = vperm.xlu1 %998, %v433_v25  }
  0x29   :  { %945 = vmatpush3.bf16.xpose.msra.mxu0 %v1003_v13  ;;  %980 = vmatpush3.bf16.xpose.msra.mxu1 %v1003_v13 }
  0x2a   :  { %946 = vmatprep.subr.bf16.mxu0 %v1004_v18  ;;  %973 = vmatprep.subr.bf16.mxu1 %v1004_v18 }
  0x2c   :  { %638 = vperm.xlu0 %997, %v607_v26   ;;  %505 = vperm.xlu1 %998, %v434_v27  }
  0x30   :  { %643 = vperm.xlu0 %997, %v608_v29   ;;  %510 = vperm.xlu1 %998, %v435_v30  }
  0x31   :  { %947 = vmatpush3.bf16.xpose.msra.mxu0 %v1004_v18  ;;  %981 = vmatpush3.bf16.xpose.msra.mxu1 %v1004_v18 }
  0x32   :  { %948 = vmatprep.subr.bf16.mxu0 %v1005_v23  ;;  %974 = vmatprep.subr.bf16.mxu1 %v1005_v23 }
  0x34   :  { %648 = vperm.xlu0 %997, %v609_v31   ;;  %515 = vperm.xlu1 %998, %v436_v32  }
  0x38   :  { %653 = vperm.xlu0 %997, %v610_v33   ;;  %658 = vperm.xlu1 %998, %v611_v34  }
  0x39   :  { %949 = vmatpush3.bf16.xpose.msra.mxu0 %v1005_v23  ;;  %982 = vmatpush3.bf16.xpose.msra.mxu1 %v1005_v23 }
  0x3a   :  { %950 = vmatprep.subr.bf16.mxu0 %v1006_v28  ;;  %975 = vmatprep.subr.bf16.mxu1 %v1006_v28 }
  0x3c   :  { %663 = vperm.xlu0 %997, %v612_v37   ;;  %668 = vperm.xlu1 %998, %v613_v38  }
  0x40   :  { %673 = vperm.xlu0 %997, %v614_v41   ;;  %678 = vperm.xlu1 %998, %v615_v42  }
  0x41   :  { %951 = vmatpush3.bf16.xpose.msra.mxu0 %v1006_v28  ;;  %983 = vmatpush3.bf16.xpose.msra.mxu1 %v1006_v28 }
  0x44   :  { %683 = vperm.xlu0 %997, %v616_v45   ;;  %688 = vperm.xlu1 %998, %v617_v46  }
  0x48   :  { %953 = vmatmul.mubr.bf16.vlgmr.msra.gmra.mrb[0].mxu0 %v1009_v35  ;;  %961 = vmatmul.mubr.bf16.vlgmr.msra.gmra.mrb[0].mxu1 %v1010_v36 }
  0x49   :  { %956 = vmatprep.mubr.bf16.mxu0 %v1011_v39  ;;  %964 = vmatprep.mubr.bf16.mxu1 %v1012_v40 }
  0x4a   :  { %693 = vperm.xlu0 %997, %v618_v47   ;;  %698 = vperm.xlu1 %998, %v619_v48  }
  0x50   :  { %957 = vmatmul.mubr.bf16.gmra.mrb[4].mxu0 %v1013_v43  ;;  %965 = vmatmul.mubr.bf16.gmra.mrb[4].mxu1 %v1014_v44 }
  0x8b   :  { %v441_v49 = vpop.permute.xlu0 %440  ;;  %v451_v50 = vpop.permute.xlu1 %450 }
  0x8c   :  { %v526_v0 = vadd.f32 %v1279_v63, %v451_v50  ;;  %v524_v3 = vadd.f32 %v1279_v63, %v441_v49 }
  0x8f   :  { %v446_v51 = vpop.permute.xlu0 %445  ;;  %v456_v52 = vpop.permute.xlu1 %455 }
  0x90   :  { %v527_v6 = vadd.f32 %v1279_v63, %v456_v52  ;;  %v525_v10 = vadd.f32 %v1279_v63, %v446_v51 }
  0x93   :  { %v461_v53 = vpop.permute.xlu0 %460  ;;  %v466_v54 = vpop.permute.xlu1 %465 }
  0x94   :  { %v528_v26 = vadd.f32 %v1279_v63, %v461_v53  ;;  %v529_v45 = vadd.f32 %v1279_v63, %v466_v54 }
  0x97   :  { %v471_v55 = vpop.permute.xlu0 %470  ;;  %v476_v56 = vpop.permute.xlu1 %475 }
  0x98   :  { %v530_v21 = vadd.f32 %v1279_v63, %v471_v55  ;;  %v531_v30 = vadd.f32 %v1279_v63, %v476_v56 }
  0x9b   :  { %v481_v57 = vpop.permute.xlu0 %480  ;;  %v486_v58 = vpop.permute.xlu1 %485 }
  0x9c   :  { %v532_v38 = vadd.f32 %v1279_v63, %v481_v57  ;;  %v533_v46 = vadd.f32 %v1279_v63, %v486_v58 }
  0x9f   :  { %v491_v59 = vpop.permute.xlu0 %490  ;;  %v1266_v60 = vpop.permute.xlu1 %623 }
  0xa0   :  { %v534_v49 = vadd.f32 %v1279_v63, %v491_v59 }
  0xa3   :  { %v1273_v61 = vpop.permute.xlu0 %628  ;;  %v496_v62 = vpop.permute.xlu1 %495 }
  0xa4   :  { %v535_v56 = vadd.f32 %v1279_v63, %v496_v62 }
  0xa7   :  { %v1282_v1 = vpop.permute.xlu0 %633  ;;  %v1284_v2 = vpop.permute.xlu1 %500 }
  0xa8   :  { %v536_v58 = vadd.f32 %v1279_v63, %v1284_v2 }
  0xab   :  { %v1290_v22 = vpop.permute.xlu0 %638  ;;  %v506_v23 = vpop.permute.xlu1 %505 }
  0xaf   :  { %v644_v47 = vpop.permute.xlu0 %643  ;;  %v511_v51 = vpop.permute.xlu1 %510 }
 0x11b   :  { %v954_v4 = vpop.f32.mrb[0].mxu0  ;;  %v962_v5 = vpop.f32.mrb[0].mxu1 }
 0x11c   :  { %v542_v7 = vadd.f32 %v954_v4, %v526_v0  ;;  %v358_v8 = vpop.f32.mrb[1].mxu0  ;;  %v390_v9 = vpop.f32.mrb[1].mxu1  ;;  %v550_v0 = vadd.f32 %v962_v5, %v534_v49 }
 0x11d   :  { %v540_v11 = vadd.f32 %v524_v3, %v358_v8  ;;  %v955_v12 = vpop.f32.mrb[2].mxu0  ;;  %v963_v13 = vpop.f32.mrb[2].mxu1  ;;  %v548_v48 = vadd.f32 %v532_v38, %v390_v9  ;;  %v537_v9 = vadd.f32 %v1279_v63, %v506_v23 }
 0x11e   :  { %v543_v14 = vadd.f32 %v955_v12, %v527_v6  ;;  %v361_v15 = vpop.f32.mrb[3].mxu0  ;;  %v393_v16 = vpop.f32.mrb[3].mxu1  ;;  %v558_v17 = vmin.f32 %v542_v7, 0.0  ;;  %v551_v6 = vadd.f32 %v963_v13, %v535_v56  ;;  %v566_v12 = vmin.f32 %v550_v0, 0.0 }
 0x11f   :  { %v556_v18 = vmin.f32 %v540_v11, 0.0  ;;  %v541_v19 = vadd.f32 %v525_v10, %v361_v15  ;;  %v549_v52 = vadd.f32 %v533_v46, %v393_v16  ;;  %v564_v3 = vmin.f32 %v548_v48, 0.0  ;;  %v649_v4 = vpop.permute.xlu0 %648  ;;  %v516_v11 = vpop.permute.xlu1 %515 }
 0x120   :  { %v559_v25 = vmin.f32 %v543_v14, 0.0  ;;  %v576_v27 = vmul.f32 1.442695, %v558_v17  ;;  %v538_v15 = vadd.f32 %v1279_v63, %v511_v51  ;;  %v567_v17 = vmin.f32 %v551_v6, 0.0 }
 0x121   :  { %v557_v20 = vmin.f32 %v541_v19, 0.0  ;;  %v572_v24 = vmul.f32 1.442695, %v556_v18  ;;  %v565_v7 = vmin.f32 %v549_v52, 0.0  ;;  %v588_v62 = vmul.f32 1.442695, %v564_v3 }
 0x122   :  { %v578_v39 = vmul.f32 1.442695, %v559_v25  ;;  %v539_v18 = vadd.f32 %v1279_v63, %v516_v11  ;;  %v592_v25 = vmul.f32 1.442695, %v566_v12 }
 0x123   :  { %v958_v28 = vpop.f32.mrb[4].mxu0  ;;  %v1293_v29 = vpop.f32.mrb[4].mxu1  ;;  %v574_v31 = vmul.f32 1.442695, %v557_v20  ;;  %1015 = vpow2.f32 %v572_v24  ;;  %v590_v2 = vmul.f32 1.442695, %v565_v7 }
 0x124   :  { %v546_v32 = vadd.f32 %v958_v28, %v530_v21  ;;  %v374_v33 = vpop.f32.mrb[5].mxu0  ;;  %v406_v34 = vpop.f32.mrb[5].mxu1  ;;  %1017 = vpow2.f32 %v576_v27 }
 0x125   :  { %v544_v35 = vadd.f32 %v528_v26, %v374_v33  ;;  %v959_v36 = vpop.f32.mrb[6].mxu0  ;;  %v1296_v37 = vpop.f32.mrb[6].mxu1  ;;  %1019 = vpow2.f32 %v574_v31  ;;  %v552_v14 = vadd.f32 %v536_v58, %v406_v34  ;;  %v554_v26 = vadd.f32 %v1293_v29, %v538_v15 }
 0x126   :  { %v547_v40 = vadd.f32 %v959_v36, %v531_v30  ;;  %v377_v41 = vpop.f32.mrb[7].mxu0  ;;  %v409_v42 = vpop.f32.mrb[7].mxu1  ;;  %v562_v43 = vmin.f32 %v546_v32, 0.0  ;;  %1021 = vpow2.f32 %v578_v39  ;;  %v594_v34 = vmul.f32 1.442695, %v567_v17 }
 0x127   :  { %v560_v44 = vmin.f32 %v544_v35, 0.0  ;;  %v545_v55 = vadd.f32 %v529_v45, %v377_v41  ;;  %v553_v13 = vadd.f32 %v537_v9, %v409_v42  ;;  %v654_v24 = vpop.permute.xlu0 %653  ;;  %v568_v27 = vmin.f32 %v552_v14, 0.0  ;;  %v659_v33 = vpop.permute.xlu1 %658 }
 0x128   :  { %v563_v53 = vmin.f32 %v547_v40, 0.0  ;;  %v584_v57 = vmul.f32 1.442695, %v562_v43  ;;  %v570_v39 = vmin.f32 %v554_v26, 0.0 }
 0x129   :  { %v580_v50 = vmul.f32 1.442695, %v560_v44  ;;  %v561_v54 = vmin.f32 %v545_v55, 0.0  ;;  %v569_v63 = vmin.f32 %v553_v13, 0.0  ;;  %v596_v29 = vmul.f32 1.442695, %v568_v27 }
 0x12a   :  { %v586_v59 = vmul.f32 1.442695, %v563_v53 }
 0x12b   :  { %1023 = vpow2.f32 %v580_v50  ;;  %v582_v8 = vmul.f32 1.442695, %v561_v54  ;;  %v664_v43 = vpop.permute.xlu0 %663  ;;  %v598_v45 = vmul.f32 1.442695, %v569_v63  ;;  %v669_v50 = vpop.permute.xlu1 %668 }
 0x12c   :  { %1025 = vpow2.f32 %v584_v57 }
 0x12d   :  { %v1016_v10 = vpop.eup %1015  ;;  %1027 = vpow2.f32 %v582_v8 }
 0x12e   :  { %v1018_v5 = vpop.eup %1017  ;;  %1029 = vpow2.f32 %v586_v59  ;;  %v701_v19 = vmul.f32 %v1016_v10, %v1266_v60  ;;  %v555_v60 = vadd.f32 %v1296_v37, %v539_v18 }
 0x12f   :  { %v1020_v16 = vpop.eup %1019  ;;  %1031 = vpow2.f32 %v588_v62  ;;  %v703_v28 = vmul.f32 %v1018_v5, %v1282_v1  ;;  %v674_v54 = vpop.permute.xlu0 %673 }
 0x130   :  { %v702_v20 = vmul.f32 %v1020_v16, %v1273_v61  ;;  %v738_v21 = vadd.f32 %v1020_v16, %v1016_v10  ;;  %v1022_v23 = vpop.eup %1021  ;;  %1033 = vpow2.f32 %v590_v2  ;;  %v571_v44 = vmin.f32 %v555_v60, 0.0  ;;  %v679_v59 = vpop.permute.xlu1 %678 }
 0x131   :  { %v704_v61 = vmul.f32 %v1022_v23, %v1290_v22  ;;  %1035 = vpow2.f32 %v592_v25  ;;  %v600_v22 = vmul.f32 1.442695, %v570_v39 }
 0x132   :  { %v717_v30 = vadd.f32 %v702_v20, %v701_v19  ;;  %v739_v31 = vadd.f32 %v1018_v5, %v738_v21  ;;  %1037 = vpow2.f32 %v594_v34  ;;  %v602_v55 = vmul.f32 1.442695, %v571_v44 }
 0x133   :  { %1039 = vpow2.f32 %v596_v29  ;;  %v684_v15 = vpop.permute.xlu0 %683 }
 0x134   :  { %v718_v35 = vadd.f32 %v717_v30, %v703_v28  ;;  %v740_v38 = vadd.f32 %v1022_v23, %v739_v31  ;;  %1041 = vpow2.f32 %v598_v45  ;;  %v689_v18 = vpop.permute.xlu1 %688 }
 0x135   :  { %v1024_v32 = vpop.eup %1023  ;;  %1043 = vpow2.f32 %v600_v22 }
 0x136   :  { %v705_v36 = vmul.f32 %v1024_v32, %v644_v47  ;;  %v1026_v40 = vpop.eup %1025  ;;  %v719_v41 = vadd.f32 %v718_v35, %v704_v61  ;;  %v741_v1 = vadd.f32 %v1024_v32, %v740_v38  ;;  %1045 = vpow2.f32 %v602_v55 }
 0x137   :  { %v1028_v42 = vpop.eup %1027  ;;  %v707_v47 = vmul.f32 %v1026_v40, %v654_v24  ;;  %v694_v28 = vpop.permute.xlu0 %693 }
 0x138   :  { %v720_v46 = vadd.f32 %v719_v41, %v705_v36  ;;  %v706_v48 = vmul.f32 %v1028_v42, %v649_v4  ;;  %v742_v37 = vadd.f32 %v1028_v42, %v741_v1  ;;  %v1030_v49 = vpop.eup %1029  ;;  %v620_v1 = vld [vmem:[%s177_s22] sm:$0x1] }
 0x139   :  { %v1032_v53 = vpop.eup %1031  ;;  %v708_v56 = vmul.f32 %v1030_v49, %v659_v33  ;;  %v699_v33 = vpop.permute.xlu1 %698  ;;  %v760_v45 = vsub.f32 1.0, %v620_v1 }
 0x13a   :  { %v721_v51 = vadd.f32 %v720_v46, %v706_v48  ;;  %v743_v52 = vadd.f32 %v1026_v40, %v742_v37  ;;  %v1034_v3 = vpop.eup %1033  ;;  %v709_v58 = vmul.f32 %v1032_v53, %v664_v43 }
 0x13b   :  { %v1036_v7 = vpop.eup %1035  ;;  %v710_v8 = vmul.f32 %v1034_v3, %v669_v50 }
 0x13c   :  { %v722_v57 = vadd.f32 %v721_v51, %v707_v47  ;;  %v744_v0 = vadd.f32 %v1030_v49, %v743_v52  ;;  %v1038_v11 = vpop.eup %1037  ;;  %v711_v12 = vmul.f32 %v1036_v7, %v674_v54 }
 0x13d   :  { %v1040_v5 = vpop.eup %1039  ;;  %v712_v16 = vmul.f32 %v1038_v11, %v679_v59 }
 0x13e   :  { %v723_v6 = vadd.f32 %v722_v57, %v708_v56  ;;  %v745_v4 = vadd.f32 %v1032_v53, %v744_v0  ;;  %v1042_v13 = vpop.eup %1041  ;;  %v713_v19 = vmul.f32 %v1040_v5, %v684_v15 }
 0x13f   :  { %v1044_v23 = vpop.eup %1043  ;;  %v714_v24 = vmul.f32 %v1042_v13, %v689_v18 }
 0x140   :  { %v724_v9 = vadd.f32 %v723_v6, %v709_v58  ;;  %v746_v10 = vadd.f32 %v1034_v3, %v745_v4  ;;  %v1046_v27 = vpop.eup %1045  ;;  %v715_v30 = vmul.f32 %v1044_v23, %v694_v28 }
 0x141   :  { %v716_v34 = vmul.f32 %v1046_v27, %v699_v33 }
 0x142   :  { %v725_v62 = vadd.f32 %v724_v9, %v710_v8  ;;  %v747_v14 = vadd.f32 %v1036_v7, %v746_v10 }
 0x144   :  { %v726_v17 = vadd.f32 %v725_v62, %v711_v12  ;;  %v748_v2 = vadd.f32 %v1038_v11, %v747_v14 }
 0x146   :  { %v727_v20 = vadd.f32 %v726_v17, %v712_v16  ;;  %v749_v21 = vadd.f32 %v1040_v5, %v748_v2 }
 0x148   :  { %v728_v25 = vadd.f32 %v727_v20, %v713_v19  ;;  %v750_v26 = vadd.f32 %v1042_v13, %v749_v21 }
 0x14a   :  { %v729_v31 = vadd.f32 %v728_v25, %v714_v24  ;;  %v751_v32 = vadd.f32 %v1044_v23, %v750_v26 }
 0x14c   :  { %v730_v60 = vadd.f32 %v729_v31, %v715_v30  ;;  %v752_v63 = vadd.f32 %v1046_v27, %v751_v32 }
 0x14e   :  { %v731_v61 = vadd.f32 %v730_v60, %v716_v34  ;;  %v753_v35 = vrot.slane %v752_v63, 4 }
 0x150   :  { %v732_v36 = vrot.slane %v731_v61, 4  ;;  %v754_v38 = vadd.f32 %v753_v35, %v752_v63 }
 0x152   :  { %v733_v39 = vadd.f32 %v732_v36, %v731_v61  ;;  %v755_v29 = vrot.slane %v754_v38, 2 }
 0x154   :  { %v734_v40 = vrot.slane %v733_v39, 2  ;;  %v756_v41 = vadd.f32 %v755_v29, %v754_v38 }
 0x156   :  { %v735_v42 = vadd.f32 %v734_v40, %v733_v39  ;;  %v757_v43 = vrot.slane %v756_v41, 1 }
 0x158   :  { %v736_v44 = vrot.slane %v735_v42, 1  ;;  %v758_v48 = vadd.f32 %v757_v43, %v756_v41 }
 0x15a   :  { %v737_v46 = vadd.f32 %v736_v44, %v735_v42 }
 0x15c   :  { %v761_v37 = vmul.f32 %v737_v46, %v620_v1  ;;  %v759_v49 = vsub.f32 %v758_v48, %v737_v46  ;;  %v784_v50 = vmul.f32 %v760_v45, %v737_v46 }
 0x15e   :  { %v763_v22 = vsel %vm762_vm0, %v761_v37, 0.0  ;;  %v773_v47 = vmul.f32 %v760_v45, %v759_v49  ;;  %v795_v51 = vmul.f32 %v759_v49, %v620_v1  ;;  %v785_v53 = vsel %vm762_vm0, %v784_v50, 0.0 }
 0x15f   :  { %764 = vadd.xlane.f32.xlu0 %v763_v22 }
 0x160   :  { %v774_v52 = vsel %vm762_vm0, %v773_v47, 0.0  ;;  %v796_v55 = vsel %vm762_vm0, %v795_v51, 0.0 }
 0x161   :  { %775 = vadd.xlane.f32.xlu1 %v774_v52 }
 0x163   :  { %786 = vadd.xlane.f32.xlu0 %v785_v53 }
 0x167   :  { %797 = vadd.xlane.f32.xlu0 %v796_v55 }
 0x1ec   :  { %v765_v56 = vpop.xlane.xlu0 %764 }
 0x1ed   :  { %v766_v57 = vrot.slane %v765_v56, 4 }
 0x1ee   :  { %v776_v0 = vpop.xlane.xlu1 %775 }
 0x1ef   :  { %v767_v3 = vadd.f32 %v766_v57, %v765_v56  ;;  %v777_v54 = vrot.slane %v776_v0, 4 }
 0x1f0   :  { %v787_v58 = vpop.xlane.xlu0 %786 }
 0x1f1   :  { %v768_v6 = vrot.slane %v767_v3, 2  ;;  %v778_v4 = vadd.f32 %v777_v54, %v776_v0  ;;  %v788_v7 = vrot.slane %v787_v58, 4 }
 0x1f3   :  { %v779_v59 = vrot.slane %v778_v4, 2  ;;  %v789_v8 = vadd.f32 %v788_v7, %v787_v58  ;;  %v769_v9 = vadd.f32 %v768_v6, %v767_v3 }
 0x1f4   :  { %v798_v10 = vpop.xlane.xlu0 %797 }
 0x1f5   :  { %v780_v11 = vadd.f32 %v779_v59, %v778_v4  ;;  %v790_v12 = vrot.slane %v789_v8, 2  ;;  %v799_v62 = vrot.slane %v798_v10, 4  ;;  %v770_v14 = vrot.slane %v769_v9, 1 }
 0x1f7   :  { %v800_v5 = vadd.f32 %v799_v62, %v798_v10  ;;  %v771_v15 = vadd.f32 %v770_v14, %v769_v9  ;;  %v781_v16 = vrot.slane %v780_v11, 1  ;;  %v791_v17 = vadd.f32 %v790_v12, %v789_v8 }
 0x1f9   :  { %v801_v2 = vrot.slane %v800_v5, 2  ;;  %984 = vpush %v771_v15  ;;  %v782_v13 = vadd.f32 %v781_v16, %v780_v11  ;;  %v792_v18 = vrot.slane %v791_v17, 1 }
 0x1fb   :  { %v802_v19 = vadd.f32 %v801_v2, %v800_v5  ;;  %986 = vpush %v782_v13  ;;  %v793_v20 = vadd.f32 %v792_v18, %v791_v17 }
 0x1fd   :  { %988 = vpush %v793_v20  ;;  %v803_v21 = vrot.slane %v802_v19, 1 }
 0x1ff   :  { %v804_v23 = vadd.f32 %v803_v21, %v802_v19 }
 0x201   :  { %990 = vpush %v804_v23 }
 0x22a   :  { %s985_s29 = spop %984 }
 0x22b   :  { %s808_s4 = smul.f32 %s985_s29, %s807_s28 }
 0x22c   :  { %s987_s13 = spop %986 }
 0x22d   :  { %v809_v24 = vstv %s808_s4  ;;  %s813_s2 = smul.f32 %s987_s13, %s807_s28 }
 0x22e   :  { %s989_s14 = spop %988  ;;  %811 = vst [vmem:[#allocation6] sm:$0xff] %v809_v24 }
 0x22f   :  { %v814_v25 = vstv %s813_s2 }
 0x230   :  { %1058 = shalt.err (!%p1055_p9)
}
 0x231   :  { %s1059_s17 = scalar_lea.hbm %s1390_s9, 128 }
 0x232   :  { %p1060_p10 = scmp.ne.s32.totalorder %s1390_s9, %s1059_s17  ;;  %p1063_p11 = scmp.lt.u32.totalorder %s1059_s17, %s1390_s9 }
 0x234   :  { %p1065_p12 = pnand %p1063_p11, %p1060_p10 }
 0x236   :  { %1068 = shalt.err (!%p1065_p12)
}
 0x237   :  { %833 = dma.vmem_to_hbm [thread:$0]  %s831_s12, 128, %s1390_s9, [#allocation7]   ;;  %816 = vst [vmem:[#allocation8] sm:$0xff] %v814_v25 }
 0x238   :  { %s818_s1 = smul.f32 %s989_s14, %s192_s0  ;;  %s991_s8 = spop %990 }
 0x239   :  { %s819_s23 = smul.f32 %s991_s8, %s195_s27  ;;  %s1069_s24 = scalar_lea.vmem %s1334_s5, 128 }
 0x23a   :  { %p1070_p13 = scmp.ne.s32.totalorder %s1334_s5, %s1069_s24  ;;  %p1074_p0 = scmp.lt.s32.totalorder %s1334_s5, %s1334_s5 }
 0x23b   :  { %p1075_p1 = scmp.lt.s32.totalorder %s1069_s24, %s1069_s24 }
 0x23d   :  { %p1076_p2 = por %p1075_p1, %p1074_p0 }
 0x23f   :  { %p1077_p3 = pnand %p1076_p2, %p1070_p13 }
 0x241   :  { %1080 = shalt.err (!%p1077_p3)
}
 0x242   :  { %s1081_s4 = scalar_lea.hbm %s1391_s10, 128 }
 0x243   :  { %p1082_p4 = scmp.ne.s32.totalorder %s1391_s10, %s1081_s4  ;;  %p1085_p5 = scmp.lt.u32.totalorder %s1081_s4, %s1391_s10 }
 0x245   :  { %p1087_p6 = pnand %p1085_p5, %p1082_p4 }
 0x247   :  { %1090 = shalt.err (!%p1087_p6)
}
 0x248   :  { %843 = dma.vmem_to_hbm [thread:$0]  %s1334_s5, 128, %s1391_s10, [#allocation9]  }
 0x249   :  { %s820_s12 = sadd.f32 %s819_s23, %s818_s1  ;;  %s1120_s13 = smov [#allocation10]  }
 0x24a   :  { %s850_s2 = sshll.u32 %s1120_s13, 4  ;;  %s851_s2 = int_to_ptr.vmem [resolvable:$true] %s850_s2 }
 0x24b   :  { %v821_v26 = vstv %s820_s12  ;;  %s1091_s3 = scalar_lea.vmem %s851_s2, 128  ;;  %p1096_p8 = scmp.lt.s32.totalorder %s851_s2, %s851_s2 }
 0x24c   :  { %823 = vst [vmem:[#allocation10] sm:$0xff] %v821_v26  ;;  %p1092_p7 = scmp.ne.s32.totalorder %s851_s2, %s1091_s3  ;;  %p1097_p9 = scmp.lt.s32.totalorder %s1091_s3, %s1091_s3 }
 0x24e   :  { %p1098_p10 = por %p1097_p9, %p1096_p8 }
 0x250   :  { %p1099_p11 = pnand %p1098_p10, %p1092_p7 }
 0x252   :  { %1102 = shalt.err (!%p1099_p11)
}
 0x253   :  { %s1103_s15 = scalar_lea.hbm %s1392_s11, 128 }
 0x254   :  { %p1104_p12 = scmp.ne.s32.totalorder %s1392_s11, %s1103_s15  ;;  %p1107_p13 = scmp.lt.u32.totalorder %s1103_s15, %s1392_s11 }
 0x256   :  { %p1109_p0 = pnand %p1107_p13, %p1104_p12 }
 0x258   :  { %1112 = shalt.err (!%p1109_p0)
}
 0x259   :  { %853 = dma.vmem_to_hbm [thread:$0]  %s851_s2, 128, %s1392_s11, [#allocation9]  }
 0x25a   :  { %1113 = dma.done.wait [#allocation7], 128  }
 0x25b   :  { %1114 = vsyncadd [#allocation7], 4294967168 }
 0x25c   :  { %1115 = dma.done.wait [#allocation9], 256  }
 0x25d   :  { %1116 = vsyncadd [#allocation9], 4294967040 }
 0x25e   :  { %863 = vsyncpa [#allocation7], 1 }
 0x25f   :  { %864 = vsyncpa [#allocation9], 1 }

</bundles_post_ra>
